<compile_context>
chip_gen: v6e
topology: v6e:2x2x1
jax: 0.10.0
libtpu: 0.0.40
codegen_flags: <defaults>
</compile_context>

<pallas_src>
import functools

import jax
import jax.numpy as jnp
from jax.experimental import pallas as pl
from jax.experimental.pallas import tpu as pltpu

_EPS = 1e-20
_LANES = 128
_SUBLANES = 8
_MAX_BLOCK_ROWS = 4096  # (4096, 128) f32 tile = 2 MiB per input per buffer


def _sublane_multiple(dtype) -> int:
    # Sublane packing requirement by itemsize (f32: 8, bf16: 16, int8/fp8: 32).
    return {4: 8, 2: 16, 1: 32}.get(jnp.dtype(dtype).itemsize, 8)


def _charbonnier_kernel(x_ref, y_ref, out_ref, *, total_rows, block_rows,
                        steps_per_core):
    # x_ref, y_ref: (block_rows, 128) input tiles in VMEM (cast to f32 here).
    # out_ref:      (8, 128) f32 partial-sum slab for this core; resident
    #               across the inner ("arbitrary") axis -> acts as accumulator.
    c = pl.program_id(0)  # core / split index ("parallel")
    i = pl.program_id(1)  # streaming step ("arbitrary")

    @pl.when(i == 0)
    def _():
        out_ref[...] = jnp.zeros_like(out_ref)

    # Logical (unclamped) block index.  The index_map clamps the DMA source so
    # a dead padding step just re-reads the last valid block; we skip its
    # contribution here via rows_left <= 0.
    b = c * steps_per_core + i
    rows_left = total_rows - b * block_rows  # scalar int32

    x = x_ref[...].astype(jnp.float32)
    y = y_ref[...].astype(jnp.float32)
    diff = x - y
    val = jnp.sqrt(diff * diff + jnp.float32(_EPS))

    @pl.when(rows_left >= block_rows)
    def _():
        # Hot path: no masking; leading-axis sum is pure VALU adds into 1 vreg.
        out_ref[...] += val.reshape(-1, _SUBLANES, _LANES).sum(axis=0)

    @pl.when(jnp.logical_and(rows_left > 0, rows_left < block_rows))
    def _():
        # Last (partially out-of-bounds) block: mask invalid rows only.
        r = jax.lax.broadcasted_iota(jnp.int32, val.shape, 0)
        masked = jnp.where(r < rows_left, val, jnp.float32(0.0))
        out_ref[...] += masked.reshape(-1, _SUBLANES, _LANES).sum(axis=0)
    # rows_left <= 0: dead step of the 2-way split -> contribute nothing.


def charbonnier_loss(x, y):
    assert x.shape == y.shape
    n = int(x.size)
    assert n > 0

    xf = jnp.ravel(x)  # row-major ravel of contiguous array: free reshape
    yf = jnp.ravel(y)

    rows = n // _LANES
    n_main = rows * _LANES

    # Ragged tail (< 128 elements): tiny plain-JAX epilogue, no full-tensor pad.
    if n_main < n:
        xt = xf[n_main:].astype(jnp.float32)
        yt = yf[n_main:].astype(jnp.float32)
        dt = xt - yt
        tail_sum = jnp.sum(jnp.sqrt(dt * dt + jnp.float32(_EPS)))
    else:
        tail_sum = jnp.float32(0.0)

    if rows == 0:
        return tail_sum / jnp.float32(n)

    if n_main < n:
        x2d = xf[:n_main].reshape(rows, _LANES)
        y2d = yf[:n_main].reshape(rows, _LANES)
    else:
        # Exactly lane-aligned (common case, incl. the demo): pure reshape.
        x2d = xf.reshape(rows, _LANES)
        y2d = yf.reshape(rows, _LANES)

    sub = max(_sublane_multiple(x.dtype), _sublane_multiple(y.dtype), _SUBLANES)
    block_rows = min(_MAX_BLOCK_ROWS, pl.cdiv(rows, sub) * sub)
    total_blocks = pl.cdiv(rows, block_rows)

    # Dual-TensorCore split (leading "parallel" axis); serial (and harmless)
    # on single-core chips.
    n_split = 2 if total_blocks >= 2 else 1
    steps_per_core = pl.cdiv(total_blocks, n_split)

    def in_map(c, i):
        # Clamp so the dead step (odd block count) re-reads a valid block.
        return (jnp.minimum(c * steps_per_core + i, total_blocks - 1), 0)

    kernel = functools.partial(
        _charbonnier_kernel,
        total_rows=rows,
        block_rows=block_rows,
        steps_per_core=steps_per_core,
    )

    bytes_in = n_main * (x.dtype.itemsize + y.dtype.itemsize)
    cost = pl.CostEstimate(
        flops=4 * n_main,
        transcendentals=n_main,
        bytes_accessed=bytes_in + n_split * _SUBLANES * _LANES * 4,
    )

    partials = pl.pallas_call(
        kernel,
        out_shape=jax.ShapeDtypeStruct((n_split * _SUBLANES, _LANES),
                                       jnp.float32),
        grid_spec=pltpu.PrefetchScalarGridSpec(
            num_scalar_prefetch=0,
            grid=(n_split, steps_per_core),
            in_specs=[
                pl.BlockSpec((block_rows, _LANES), in_map),
                pl.BlockSpec((block_rows, _LANES), in_map),
            ],
            out_specs=pl.BlockSpec((_SUBLANES, _LANES), lambda c, i: (c, 0)),
        ),
        compiler_params=pltpu.CompilerParams(
            dimension_semantics=("parallel", "arbitrary")),
        cost_estimate=cost,
    )(x2d, y2d)

    return (jnp.sum(partials) + tail_sum) / jnp.float32(n)


if __name__ == "__main__":
    key = jax.random.PRNGKey(0)
    kx, ky = jax.random.split(key)
    x = jax.random.normal(kx, (2, 4, 16, 16), dtype=jnp.float32)  # NCHW
    y = jax.random.normal(ky, (2, 4, 16, 16), dtype=jnp.float32)  # NCHW

    loss = charbonnier_loss(x, y)
    jax.block_until_ready(loss)

    # Reference check (plain JAX, same math as the PyTorch module).
    ref = jnp.mean(jnp.sqrt((x - y) ** 2 + _EPS))
    assert jnp.allclose(loss, ref, rtol=1e-5, atol=1e-6), (loss, ref)

    print("KERNEL_OK")
</pallas_src>

<mosaic_0001>
module attributes {stable_mosaic.version = 11 : i64} {
  func.func @_charbonnier_kernel(%arg0: i32, %arg1: i32, %arg2: memref<16x128xf32, #tpu.memory_space<vmem>>, %arg3: memref<16x128xf32, #tpu.memory_space<vmem>>, %arg4: memref<8x128xf32, #tpu.memory_space<vmem>>) attributes {dimension_semantics = [#tpu.dimension_semantics<parallel>, #tpu.dimension_semantics<arbitrary>], iteration_bounds = array<i64: 1, 1>, scalar_prefetch = 0 : i64, scratch_operands = 0 : i64, tpu.core_type = #tpu.core_type<tc>, window_params = [{transform_indices = @transform_0, window_bounds = array<i64: 16, 128>}, {transform_indices = @transform_1, window_bounds = array<i64: 16, 128>}, {transform_indices = @transform_2, window_bounds = array<i64: 8, 128>}]} {
    %c0_i32 = arith.constant 0 : i32
    %0 = arith.cmpi eq, %arg1, %c0_i32 : i32
    %1 = arith.extui %0 : i1 to i32
    %c0_i32_0 = arith.constant 0 : i32
    %2 = arith.cmpi ne, %1, %c0_i32_0 : i32
    scf.if %2 {
      %cst_10 = arith.constant 0.000000e+00 : f32
      %22 = vector.broadcast %cst_10 : f32 to vector<8x128xf32>
      %c0_11 = arith.constant 0 : index
      %c0_12 = arith.constant 0 : index
      %23 = vector.load %arg4[%c0_11, %c0_12] : memref<8x128xf32, #tpu.memory_space<vmem>>, vector<8x128xf32>
      tpu.vector_store %arg4[%c0_11, %c0_12], %22 {strides = array<i32>} : memref<8x128xf32, #tpu.memory_space<vmem>>, vector<8x128xf32>,
    } else {
    }
    %c1_i32 = arith.constant 1 : i32
    %3 = arith.muli %arg0, %c1_i32 : i32
    %4 = arith.addi %3, %arg1 : i32
    %c16_i32 = arith.constant 16 : i32
    %5 = arith.muli %4, %c16_i32 : i32
    %c16_i32_1 = arith.constant 16 : i32
    %6 = arith.subi %c16_i32_1, %5 : i32
    %c0 = arith.constant 0 : index
    %c0_2 = arith.constant 0 : index
    %7 = vector.load %arg2[%c0, %c0_2] : memref<16x128xf32, #tpu.memory_space<vmem>>, vector<16x128xf32>
    %c0_3 = arith.constant 0 : index
    %c0_4 = arith.constant 0 : index
    %8 = vector.load %arg3[%c0_3, %c0_4] : memref<16x128xf32, #tpu.memory_space<vmem>>, vector<16x128xf32>
    %9 = arith.subf %7, %8 : vector<16x128xf32>
    %10 = arith.mulf %9, %9 : vector<16x128xf32>
    %cst = arith.constant 9.99999968E-21 : f32
    %11 = vector.broadcast %cst : f32 to vector<16x128xf32>
    %12 = arith.addf %10, %11 : vector<16x128xf32>
    %13 = math.sqrt %12 : vector<16x128xf32>
    %c16_i32_5 = arith.constant 16 : i32
    %14 = arith.cmpi sge, %6, %c16_i32_5 : i32
    %15 = arith.extui %14 : i1 to i32
    %c0_i32_6 = arith.constant 0 : i32
    %16 = arith.cmpi ne, %15, %c0_i32_6 : i32
    scf.if %16 {
      %c0_10 = arith.constant 0 : index
      %c0_11 = arith.constant 0 : index
      %22 = vector.load %arg4[%c0_10, %c0_11] : memref<8x128xf32, #tpu.memory_space<vmem>>, vector<8x128xf32>
      %23 = vector.shape_cast %13 : vector<16x128xf32> to vector<2x8x128xf32>
      %cst_12 = arith.constant dense<0.000000e+00> : vector<8x128xf32>
      %24 = vector.multi_reduction <add>, %23, %cst_12 [0] : vector<2x8x128xf32> to vector<8x128xf32>
      %25 = arith.addf %22, %24 : vector<8x128xf32>
      %c0_13 = arith.constant 0 : index
      %c0_14 = arith.constant 0 : index
      %26 = vector.load %arg4[%c0_13, %c0_14] : memref<8x128xf32, #tpu.memory_space<vmem>>, vector<8x128xf32>
      tpu.vector_store %arg4[%c0_13, %c0_14], %25 {strides = array<i32>} : memref<8x128xf32, #tpu.memory_space<vmem>>, vector<8x128xf32>,
    } else {
    }
    %c0_i32_7 = arith.constant 0 : i32
    %17 = arith.cmpi sgt, %6, %c0_i32_7 : i32
    %c16_i32_8 = arith.constant 16 : i32
    %18 = arith.cmpi slt, %6, %c16_i32_8 : i32
    %19 = arith.andi %17, %18 : i1
    %20 = arith.extui %19 : i1 to i32
    %c0_i32_9 = arith.constant 0 : i32
    %21 = arith.cmpi ne, %20, %c0_i32_9 : i32
    scf.if %21 {
      %22 = tpu.iota {dimensions = array<i32: 0>} : vector<16x128xi32>
      %23 = vector.broadcast %6 : i32 to vector<16x128xi32>
      %24 = arith.cmpi slt, %22, %23 : vector<16x128xi32>
      %cst_10 = arith.constant 0.000000e+00 : f32
      %25 = vector.broadcast %cst_10 : f32 to vector<16x128xf32>
      %26 = arith.select %24, %13, %25 : vector<16x128xi1>, vector<16x128xf32>
      %c0_11 = arith.constant 0 : index
      %c0_12 = arith.constant 0 : index
      %27 = vector.load %arg4[%c0_11, %c0_12] : memref<8x128xf32, #tpu.memory_space<vmem>>, vector<8x128xf32>
      %28 = vector.shape_cast %26 : vector<16x128xf32> to vector<2x8x128xf32>
      %cst_13 = arith.constant dense<0.000000e+00> : vector<8x128xf32>
      %29 = vector.multi_reduction <add>, %28, %cst_13 [0] : vector<2x8x128xf32> to vector<8x128xf32>
      %30 = arith.addf %27, %29 : vector<8x128xf32>
      %c0_14 = arith.constant 0 : index
      %c0_15 = arith.constant 0 : index
      %31 = vector.load %arg4[%c0_14, %c0_15] : memref<8x128xf32, #tpu.memory_space<vmem>>, vector<8x128xf32>
      tpu.vector_store %arg4[%c0_14, %c0_15], %30 {strides = array<i32>} : memref<8x128xf32, #tpu.memory_space<vmem>>, vector<8x128xf32>,
    } else {
    }
    return
  }
  func.func @transform_0(%arg0: i32, %arg1: i32) -> (i32, i32) {
    %c1_i32 = arith.constant 1 : i32
    %0 = arith.muli %arg0, %c1_i32 : i32
    %1 = arith.addi %0, %arg1 : i32
    %c0_i32 = arith.constant 0 : i32
    %2 = arith.minsi %1, %c0_i32 : i32
    %c0_i32_0 = arith.constant 0 : i32
    %c0_i32_1 = arith.constant 0 : i32
    return %2, %c0_i32_0 : i32, i32
  }
  func.func @transform_1(%arg0: i32, %arg1: i32) -> (i32, i32) {
    %c1_i32 = arith.constant 1 : i32
    %0 = arith.muli %arg0, %c1_i32 : i32
    %1 = arith.addi %0, %arg1 : i32
    %c0_i32 = arith.constant 0 : i32
    %2 = arith.minsi %1, %c0_i32 : i32
    %c0_i32_0 = arith.constant 0 : i32
    %c0_i32_1 = arith.constant 0 : i32
    return %2, %c0_i32_0 : i32, i32
  }
  func.func @transform_2(%arg0: i32, %arg1: i32) -> (i32, i32) {
    %c0_i32 = arith.constant 0 : i32
    %c0_i32_0 = arith.constant 0 : i32
    return %arg0, %c0_i32 : i32, i32
  }
}

</mosaic_0001>

<bundles_post_ra>
// kernel: tpu_custom_call.1
= control target key start
LH: loop header
LB: loop body
LE: loop exit
PB: predicated region body
PF: predicated region fallthrough
CT: control target
= control target key end

     0   :  { %7 = vsyncpa [#allocation3], 0  ;;  %s243_s0 = inlined_call_operand.hbm [shape: f32[16,128], index: 0, kind: input, shape index: {}]   ;;  %s244_s1 = inlined_call_operand.hbm [shape: f32[16,128], index: 1, kind: input, shape index: {}]   ;;  %s245_s2 = inlined_call_operand.hbm [shape: f32[8,128], index: 2, kind: output, shape index: {}]  }
   0x1   :  { %8 = vsyncpa [#allocation6], 0 }
   0x2   :  { %9 = vsyncpa [#allocation4], 0  ;;  %s214_s9 = smov [#allocation2]  }
   0x3   :  { %s21_s10 = sshll.u32 %s214_s9, 4  ;;  %s22_s10 = int_to_ptr.vmem [resolvable:$true] %s21_s10 }
   0x4   :  { %s156_s11 = scalar_lea.vmem %s22_s10, 256  ;;  %p161_p1 = scmp.lt.s32.totalorder %s22_s10, %s22_s10 }
   0x5   :  { %p157_p0 = scmp.ne.s32.totalorder %s22_s10, %s156_s11  ;;  %p162_p2 = scmp.lt.s32.totalorder %s156_s11, %s156_s11 }
   0x7   :  { %p163_p3 = por %p162_p2, %p161_p1 }
   0x9   :  { %p164_p4 = pnand %p163_p3, %p157_p0 }
   0xb   :  { %167 = shalt.err (!%p164_p4)
}
   0xc   :  { %s215_s12 = smov 128   ;;  %s216_s13 = smov 8  }
   0xd   :  { %27 = dma.hbm_to_vmem [thread:$0]  %s243_s0, 256, %s22_s10, [#allocation3], %s215_s12, %s215_s12, %s216_s13  }
   0xe   :  { %s217_s16 = smov [#allocation5]  }
   0xf   :  { %s39_s17 = sshll.u32 %s217_s16, 4  ;;  %s40_s17 = int_to_ptr.vmem [resolvable:$true] %s39_s17 }
  0x10   :  { %s176_s18 = scalar_lea.vmem %s40_s17, 256  ;;  %p181_p6 = scmp.lt.s32.totalorder %s40_s17, %s40_s17 }
  0x11   :  { %p177_p5 = scmp.ne.s32.totalorder %s40_s17, %s176_s18  ;;  %p182_p7 = scmp.lt.s32.totalorder %s176_s18, %s176_s18 }
  0x13   :  { %p183_p8 = por %p182_p7, %p181_p6 }
  0x15   :  { %p184_p9 = pnand %p183_p8, %p177_p5 }
  0x17   :  { %187 = shalt.err (!%p184_p9)
}
  0x18   :  { %45 = dma.hbm_to_vmem [thread:$0]  %s244_s1, 256, %s40_s17, [#allocation6], %s215_s12, %s215_s12, %s216_s13  }
  0x19   :  { %208 = dma.done.wait [#allocation3], 256  }
  0x1a   :  { %209 = vsyncadd [#allocation3], 4294967040 }
  0x1b   :  { %210 = dma.done.wait [#allocation6], 256  }
  0x1c   :  { %211 = vsyncadd [#allocation6], 4294967040  ;;  %v68_v0 = vld [vmem:[#allocation2] sm:$0xff]  ;;  %v69_v1 = vld [vmem:[#allocation2 + $0x8] sm:$0xff]  ;;  %s218_s0 = smov [#allocation7]  }
  0x1d   :  { %v70_v2 = vld [vmem:[#allocation5] sm:$0xff]  ;;  %v71_v3 = vld [vmem:[#allocation5 + $0x8] sm:$0xff]  ;;  %s124_s1 = sshll.u32 %s218_s0, 4  ;;  %s125_s1 = int_to_ptr.vmem [resolvable:$true] %s124_s1 }
  0x1e   :  { %v72_v4 = vsub.f32 %v68_v0, %v70_v2  ;;  %v73_v5 = vsub.f32 %v69_v1, %v71_v3  ;;  %s188_s21 = scalar_lea.vmem %s125_s1, 128  ;;  %p193_p11 = scmp.lt.s32.totalorder %s125_s1, %s125_s1 }
  0x1f   :  { %p189_p10 = scmp.ne.s32.totalorder %s125_s1, %s188_s21  ;;  %p194_p12 = scmp.lt.s32.totalorder %s188_s21, %s188_s21 }
  0x20   :  { %v74_v6 = vmul.f32 %v72_v4, %v72_v4  ;;  %v75_v7 = vmul.f32 %v73_v5, %v73_v5 }
  0x21   :  { %p195_p13 = por %p194_p12, %p193_p11 }
  0x22   :  { %v76_v8 = vadd.f32 1e-20, %v74_v6  ;;  %v77_v9 = vadd.f32 1e-20, %v75_v7 }
  0x23   :  { %p196_p0 = pnand %p195_p13, %p189_p10 }
  0x24   :  { %144 = vrsqrt.f32 %v76_v8  ;;  %vm80_vm0 = vcmp.eq.f32.partialorder %v76_v8, inf  ;;  %v83_v11 = vand.u32 2147483648, %v76_v8  ;;  %vm82_vm1 = vcmp.eq.f32.partialorder %v76_v8, 0.0 }
  0x25   :  { %146 = vrsqrt.f32 %v77_v9  ;;  %vm87_vm2 = vcmp.eq.f32.partialorder %v77_v9, inf  ;;  %v90_v14 = vand.u32 2147483648, %v77_v9  ;;  %vm89_vm3 = vcmp.eq.f32.partialorder %v77_v9, 0.0 }
  0x31   :  { %v145_v10 = vpop.eup %144 }
  0x32   :  { %v147_v12 = vpop.eup %146  ;;  %v79_v13 = vmul.f32 %v145_v10, %v76_v8 }
  0x33   :  { %v86_v15 = vmul.f32 %v147_v12, %v77_v9 }
  0x34   :  { %v81_v16 = vsel %vm80_vm0, %v76_v8, %v79_v13 }
  0x35   :  { %v84_v17 = vsel %vm82_vm1, %v83_v11, %v81_v16  ;;  %v88_v18 = vsel %vm87_vm2, %v77_v9, %v86_v15 }
  0x36   :  { %v91_v19 = vsel %vm89_vm3, %v90_v14, %v88_v18 }
  0x37   :  { %v97_v20 = vadd.f32 %v91_v19, %v84_v17 }
  0x39   :  { %99 = vst [vmem:[#allocation7] sm:$0xff] %v97_v20 }
  0x3a   :  { %199 = shalt.err (!%p196_p0)
}
  0x3b   :  { %127 = dma.vmem_to_hbm [thread:$0]  %s125_s1, 128, %s245_s2, [#allocation4]  }
  0x3c   :  { %212 = dma.done.wait [#allocation4], 128  }
  0x3d   :  { %213 = vsyncadd [#allocation4], 4294967168 }
  0x3e   :  { %131 = vsyncpa [#allocation3], 1 }
  0x3f   :  { %132 = vsyncpa [#allocation6], 1 }
  0x40   :  { %133 = vsyncpa [#allocation4], 1 }

</bundles_post_ra>
